<compile_context>
chip_gen: v7x
topology: tpu7x:2x2x1
jax: 0.10.0
libtpu: 0.0.40
codegen_flags: <defaults>
</compile_context>

<pallas_src>
import functools
import math

import jax
import jax.numpy as jnp
import numpy as np
from jax.experimental import pallas as pl
from jax.experimental.pallas import tpu as pltpu


def _round_up(v, m):
    return ((v + m - 1) // m) * m


def _fused_conv_block_kernel(x_ref, w1_ref, b1_ref, a1_ref, m1_ref,
                             w2_ref, b2_ref, a2_ref, o_ref, y1_ref,
                             *, shifts, in_off, halo, width):
    """Fused [conv3x3(pad=1) -> PReLU] x 2 for one batch element.

    Layout: channels on sublanes, flattened padded spatial on lanes.
      x_ref : (C1, Lin)              zero-extended flat input (matmul dtype)
      w*_ref: (9, C2, C)             per-tap weight matrices (matmul dtype)
      b*_ref, a*_ref: (C2, 1)        f32 bias / PReLU slope
      m1_ref: (1, width)             f32 0/1 interior mask = layer-2 zero pad
      o_ref : (C2, width)            output over the padded-flat grid
      y1_ref: VMEM (C2, width+2*halo) layer-1 activation (never leaves VMEM)
    """
    c2 = o_ref.shape[0]

    def conv_prelu(read, w_ref, b_ref, a_ref):
        # 9 accumulating MXU matmuls; a 3x3 spatial tap is a static lane shift
        # in the flat padded layout, fed straight to the MXU (no im2col).
        acc = jnp.dot(w_ref[0], read(shifts[0]),
                      preferred_element_type=jnp.float32)
        for t in range(1, 9):
            acc = acc + jnp.dot(w_ref[t], read(shifts[t]),
                                preferred_element_type=jnp.float32)
        y = acc + b_ref[...]
        return jnp.where(y > 0.0, y, a_ref[...] * y)          # PReLU (f32)

    # ---- layer 1: slices read directly from the zero-extended input block.
    y1 = conv_prelu(lambda s: x_ref[:, in_off + s:in_off + s + width],
                    w1_ref, b1_ref, a1_ref)

    # The interior mask IS layer-2's zero padding (done in VMEM).  The
    # lane-aligned 128-wide halo strips stay zero so layer-2 edge taps read 0.
    y1_ref[:, :halo] = jnp.zeros((c2, halo), y1_ref.dtype)
    y1_ref[:, halo + width:] = jnp.zeros((c2, halo), y1_ref.dtype)
    y1_ref[:, halo:halo + width] = (y1 * m1_ref[...]).astype(y1_ref.dtype)

    # ---- layer 2: intermediate stays resident in VMEM.
    y2 = conv_prelu(lambda s: y1_ref[:, halo + s:halo + s + width],
                    w2_ref, b2_ref, a2_ref)
    o_ref[...] = y2.astype(o_ref.dtype)


def conv_block_forward(x_nchw, params, *, matmul_dtype=jnp.float32):
    """ConvBlock.forward (depths=2) as one fused Pallas call.  x: NCHW."""
    (w1, b1, a1), (w2, b2, a2) = params          # weights stored HWIO
    N, Cin, H, W = x_nchw.shape
    Cout = w1.shape[-1]
    C1 = _round_up(Cin, 8)                       # sublane-align channel dims
    C2 = _round_up(Cout, 8)

    Wp, Hp = W + 2, H + 2                        # conv-padded spatial dims
    P = Hp * Wp                                  # padded-flat spatial length
    Pp = _round_up(P, 128)                       # lane-dense compute/out width
    R = Wp + 1                                   # max flat 3x3 tap shift
    HALO = _round_up(R, 128)                     # lane-aligned y1 halo (>= R)

    # Single fused pad pass: channel round-up + 1px conv pad + flat halo as
    # whole zero rows (left >= R lanes, right >= (Pp - P) + R lanes).
    top = -(-R // Wp)
    bot = -(-((Pp - P) + R) // Wp)
    x = jnp.pad(x_nchw, ((0, 0), (0, C1 - Cin), (1 + top, 1 + bot), (1, 1)))
    x = x.reshape(N, C1, (Hp + top + bot) * Wp).astype(matmul_dtype)
    Lin = x.shape[-1]
    in_off = top * Wp                            # flat start of the padded grid

    # NOTE: the flat layout wraps kx=+-1 taps across row boundaries; this is
    # safe because the 1px spatial pad plus the interior mask guarantee wrapped
    # positions never contribute to kept outputs.  Keep pad/halo/mask in sync.
    shifts = tuple((ky - 1) * Wp + (kx - 1)      # tap index t = ky*3 + kx
                   for ky in range(3) for kx in range(3))

    # Per-tap weight matrices (9, C2, Cin_pad), pre-cast to the matmul dtype.
    def pack_w(w_hwio, cin_pad):
        w = jnp.transpose(w_hwio, (0, 1, 3, 2)).reshape(9, Cout, -1)
        w = jnp.pad(w, ((0, 0), (0, C2 - Cout), (0, cin_pad - w.shape[-1])))
        return w.astype(matmul_dtype)

    def pack_vec(v):                              # -> (C2, 1) f32
        return jnp.pad(v, (0, C2 - v.shape[0])).reshape(C2, 1).astype(jnp.float32)

    w1m, w2m = pack_w(w1, C1), pack_w(w2, C2)
    b1p, a1p = pack_vec(b1), pack_vec(a1)
    b2p, a2p = pack_vec(b2), pack_vec(a2)

    # 0/1 interior mask over the layer-1 output grid (host-built, f32).
    j = np.arange(Pp)
    r, c = j // Wp, j % Wp
    valid = (j < P) & (r >= 1) & (r <= H) & (c >= 1) & (c <= W)
    mask1 = jnp.asarray(valid.astype(np.float32)).reshape(1, Pp)

    kernel = functools.partial(_fused_conv_block_kernel,
                               shifts=shifts, in_off=in_off,
                               halo=HALO, width=Pp)

    out = pl.pallas_call(
        kernel,
        out_shape=jax.ShapeDtypeStruct((N, C2, Pp), x_nchw.dtype),
        grid_spec=pltpu.PrefetchScalarGridSpec(
            num_scalar_prefetch=0,
            grid=(N,),
            in_specs=[
                pl.BlockSpec((pl.Squeezed(), C1, Lin), lambda n: (n, 0, 0)),
                pl.BlockSpec((9, C2, C1), lambda n: (0, 0, 0)),
                pl.BlockSpec((C2, 1), lambda n: (0, 0)),
                pl.BlockSpec((C2, 1), lambda n: (0, 0)),
                pl.BlockSpec((1, Pp), lambda n: (0, 0)),
                pl.BlockSpec((9, C2, C2), lambda n: (0, 0, 0)),
                pl.BlockSpec((C2, 1), lambda n: (0, 0)),
                pl.BlockSpec((C2, 1), lambda n: (0, 0)),
            ],
            out_specs=pl.BlockSpec((pl.Squeezed(), C2, Pp), lambda n: (n, 0, 0)),
            scratch_shapes=[
                pltpu.VMEM((C2, Pp + 2 * HALO), matmul_dtype),   # layer-1 act.
            ],
        ),
        compiler_params=pltpu.CompilerParams(
            dimension_semantics=("parallel",)),
    )(x, w1m, b1p, a1p, mask1, w2m, b2p, a2p)

    # Drop flat/channel padding and the 1px ring; output is already NCHW.
    out = out[:, :Cout, :P].reshape(N, Cout, Hp, Wp)
    return out[:, :, 1:H + 1, 1:W + 1]


def init_conv_block_params(key, in_dim, out_dim, depths=2):
    """Deterministic init mirroring ConvBlock._init_weights + PReLU default."""
    params = []
    for i in range(depths):
        cin = in_dim if i == 0 else out_dim
        key, wk = jax.random.split(key)
        fan_out = 3 * 3 * out_dim
        std = math.sqrt(2.0 / fan_out)
        # PyTorch layout is (Cout, Cin, kH, kW); store as HWIO (kH, kW, Cin, Cout).
        w_oihw = std * jax.random.normal(wk, (out_dim, cin, 3, 3), jnp.float32)
        w_hwio = jnp.transpose(w_oihw, (2, 3, 1, 0))
        b = jnp.zeros((out_dim,), jnp.float32)
        a = jnp.full((out_dim,), 0.25, jnp.float32)   # PReLU default slope
        params.append((w_hwio, b, a))
    return params


def _reference_forward(x_nchw, params):
    """Pure-JAX reference (lax conv) for correctness checking."""
    x = x_nchw
    for (w_hwio, b, a) in params:
        w_oihw = jnp.transpose(w_hwio, (3, 2, 0, 1))
        y = jax.lax.conv_general_dilated(
            x, w_oihw, window_strides=(1, 1), padding=((1, 1), (1, 1)),
            dimension_numbers=("NCHW", "OIHW", "NCHW"))
        y = y + b[None, :, None, None]
        x = jnp.where(y > 0, y, a[None, :, None, None] * y)
    return x


if __name__ == "__main__":
    key = jax.random.PRNGKey(0)
    key, xk = jax.random.split(key)

    N, Cin, Cout, H, W = 2, 4, 8, 16, 16
    x = jax.random.normal(xk, (N, Cin, H, W), jnp.float32)
    params = init_conv_block_params(key, Cin, Cout, depths=2)

    ref = _reference_forward(x, params)

    # f32 MXU-operand path
    out = conv_block_forward(x, params)
    out = jax.block_until_ready(out)
    assert out.shape == (N, Cout, H, W)
    assert jnp.allclose(out, ref, atol=1e-3, rtol=1e-3)

    # bf16 matmul operands (f32 accumulate / epilogue); valid on v5e/v6e/v7x MXU
    out_bf16 = conv_block_forward(x, params, matmul_dtype=jnp.bfloat16)
    out_bf16 = jax.block_until_ready(out_bf16)
    assert jnp.allclose(out_bf16, ref, atol=1e-1, rtol=1e-1)

    print("KERNEL_OK")
</pallas_src>

<mosaic_0001>
module attributes {stable_mosaic.version = 11 : i64} {
  func.func @_fused_conv_block_kernel(%arg0: i32, %arg1: memref<1x8x450xf32, #tpu.memory_space<vmem>>, %arg2: memref<9x8x8xf32, #tpu.memory_space<vmem>>, %arg3: memref<8x1xf32, #tpu.memory_space<vmem>>, %arg4: memref<8x1xf32, #tpu.memory_space<vmem>>, %arg5: memref<1x384xf32, #tpu.memory_space<vmem>>, %arg6: memref<9x8x8xf32, #tpu.memory_space<vmem>>, %arg7: memref<8x1xf32, #tpu.memory_space<vmem>>, %arg8: memref<8x1xf32, #tpu.memory_space<vmem>>, %arg9: memref<1x8x384xf32, #tpu.memory_space<vmem>>, %arg10: memref<8x640xf32, #tpu.memory_space<vmem>>) attributes {dimension_semantics = [#tpu.dimension_semantics<parallel>], iteration_bounds = array<i64: 2>, scalar_prefetch = 0 : i64, scratch_operands = 1 : i64, tpu.core_type = #tpu.core_type<tc>, window_params = [{transform_indices = @transform_0, window_bounds = array<i64: 1, 8, 450>}, {pipeline_mode = #tpu.pipeline_mode<synchronous>, transform_indices = @transform_1, window_bounds = array<i64: 9, 8, 8>}, {pipeline_mode = #tpu.pipeline_mode<synchronous>, transform_indices = @transform_2, window_bounds = array<i64: 8, 1>}, {pipeline_mode = #tpu.pipeline_mode<synchronous>, transform_indices = @transform_3, window_bounds = array<i64: 8, 1>}, {pipeline_mode = #tpu.pipeline_mode<synchronous>, transform_indices = @transform_4, window_bounds = array<i64: 1, 384>}, {pipeline_mode = #tpu.pipeline_mode<synchronous>, transform_indices = @transform_5, window_bounds = array<i64: 9, 8, 8>}, {pipeline_mode = #tpu.pipeline_mode<synchronous>, transform_indices = @transform_6, window_bounds = array<i64: 8, 1>}, {pipeline_mode = #tpu.pipeline_mode<synchronous>, transform_indices = @transform_7, window_bounds = array<i64: 8, 1>}, {transform_indices = @transform_8, window_bounds = array<i64: 1, 8, 384>}]} {
    %c0 = arith.constant 0 : index
    %c0_0 = arith.constant 0 : index
    %c0_1 = arith.constant 0 : index
    %0 = vector.load %arg2[%c0, %c0_0, %c0_1] : memref<9x8x8xf32, #tpu.memory_space<vmem>>, vector<1x8x8xf32>
    %1 = vector.shape_cast %0 : vector<1x8x8xf32> to vector<8x8xf32>
    %c0_2 = arith.constant 0 : index
    %c0_3 = arith.constant 0 : index
    %c17 = arith.constant 17 : index
    %2 = vector.load %arg1[%c0_2, %c0_3, %c17] : memref<1x8x450xf32, #tpu.memory_space<vmem>>, vector<1x8x384xf32>
    %3 = vector.shape_cast %2 : vector<1x8x384xf32> to vector<8x384xf32>
    %cst = arith.constant dense<0.000000e+00> : vector<8x384xf32>
    %4 = tpu.matmul %1, %3, %cst {dimension_numbers = #tpu.dot_dimension_numbers<[1], [0], [0], [1], [0, 0, 1, 1], [], []>} : vector<8x8xf32>, vector<8x384xf32>, vector<8x384xf32> -> vector<8x384xf32>
    %c1 = arith.constant 1 : index
    %c0_4 = arith.constant 0 : index
    %c0_5 = arith.constant 0 : index
    %5 = vector.load %arg2[%c1, %c0_4, %c0_5] : memref<9x8x8xf32, #tpu.memory_space<vmem>>, vector<1x8x8xf32>
    %6 = vector.shape_cast %5 : vector<1x8x8xf32> to vector<8x8xf32>
    %c0_6 = arith.constant 0 : index
    %c0_7 = arith.constant 0 : index
    %c18 = arith.constant 18 : index
    %7 = vector.load %arg1[%c0_6, %c0_7, %c18] : memref<1x8x450xf32, #tpu.memory_space<vmem>>, vector<1x8x384xf32>
    %8 = vector.shape_cast %7 : vector<1x8x384xf32> to vector<8x384xf32>
    %cst_8 = arith.constant dense<0.000000e+00> : vector<8x384xf32>
    %9 = tpu.matmul %6, %8, %cst_8 {dimension_numbers = #tpu.dot_dimension_numbers<[1], [0], [0], [1], [0, 0, 1, 1], [], []>} : vector<8x8xf32>, vector<8x384xf32>, vector<8x384xf32> -> vector<8x384xf32>
    %10 = arith.addf %4, %9 : vector<8x384xf32>
    %c2 = arith.constant 2 : index
    %c0_9 = arith.constant 0 : index
    %c0_10 = arith.constant 0 : index
    %11 = vector.load %arg2[%c2, %c0_9, %c0_10] : memref<9x8x8xf32, #tpu.memory_space<vmem>>, vector<1x8x8xf32>
    %12 = vector.shape_cast %11 : vector<1x8x8xf32> to vector<8x8xf32>
    %c0_11 = arith.constant 0 : index
    %c0_12 = arith.constant 0 : index
    %c19 = arith.constant 19 : index
    %13 = vector.load %arg1[%c0_11, %c0_12, %c19] : memref<1x8x450xf32, #tpu.memory_space<vmem>>, vector<1x8x384xf32>
    %14 = vector.shape_cast %13 : vector<1x8x384xf32> to vector<8x384xf32>
    %cst_13 = arith.constant dense<0.000000e+00> : vector<8x384xf32>
    %15 = tpu.matmul %12, %14, %cst_13 {dimension_numbers = #tpu.dot_dimension_numbers<[1], [0], [0], [1], [0, 0, 1, 1], [], []>} : vector<8x8xf32>, vector<8x384xf32>, vector<8x384xf32> -> vector<8x384xf32>
    %16 = arith.addf %10, %15 : vector<8x384xf32>
    %c3 = arith.constant 3 : index
    %c0_14 = arith.constant 0 : index
    %c0_15 = arith.constant 0 : index
    %17 = vector.load %arg2[%c3, %c0_14, %c0_15] : memref<9x8x8xf32, #tpu.memory_space<vmem>>, vector<1x8x8xf32>
    %18 = vector.shape_cast %17 : vector<1x8x8xf32> to vector<8x8xf32>
    %c0_16 = arith.constant 0 : index
    %c0_17 = arith.constant 0 : index
    %c35 = arith.constant 35 : index
    %19 = vector.load %arg1[%c0_16, %c0_17, %c35] : memref<1x8x450xf32, #tpu.memory_space<vmem>>, vector<1x8x384xf32>
    %20 = vector.shape_cast %19 : vector<1x8x384xf32> to vector<8x384xf32>
    %cst_18 = arith.constant dense<0.000000e+00> : vector<8x384xf32>
    %21 = tpu.matmul %18, %20, %cst_18 {dimension_numbers = #tpu.dot_dimension_numbers<[1], [0], [0], [1], [0, 0, 1, 1], [], []>} : vector<8x8xf32>, vector<8x384xf32>, vector<8x384xf32> -> vector<8x384xf32>
    %22 = arith.addf %16, %21 : vector<8x384xf32>
    %c4 = arith.constant 4 : index
    %c0_19 = arith.constant 0 : index
    %c0_20 = arith.constant 0 : index
    %23 = vector.load %arg2[%c4, %c0_19, %c0_20] : memref<9x8x8xf32, #tpu.memory_space<vmem>>, vector<1x8x8xf32>
    %24 = vector.shape_cast %23 : vector<1x8x8xf32> to vector<8x8xf32>
    %c0_21 = arith.constant 0 : index
    %c0_22 = arith.constant 0 : index
    %c36 = arith.constant 36 : index
    %25 = vector.load %arg1[%c0_21, %c0_22, %c36] : memref<1x8x450xf32, #tpu.memory_space<vmem>>, vector<1x8x384xf32>
    %26 = vector.shape_cast %25 : vector<1x8x384xf32> to vector<8x384xf32>
    %cst_23 = arith.constant dense<0.000000e+00> : vector<8x384xf32>
    %27 = tpu.matmul %24, %26, %cst_23 {dimension_numbers = #tpu.dot_dimension_numbers<[1], [0], [0], [1], [0, 0, 1, 1], [], []>} : vector<8x8xf32>, vector<8x384xf32>, vector<8x384xf32> -> vector<8x384xf32>
    %28 = arith.addf %22, %27 : vector<8x384xf32>
    %c5 = arith.constant 5 : index
    %c0_24 = arith.constant 0 : index
    %c0_25 = arith.constant 0 : index
    %29 = vector.load %arg2[%c5, %c0_24, %c0_25] : memref<9x8x8xf32, #tpu.memory_space<vmem>>, vector<1x8x8xf32>
    %30 = vector.shape_cast %29 : vector<1x8x8xf32> to vector<8x8xf32>
    %c0_26 = arith.constant 0 : index
    %c0_27 = arith.constant 0 : index
    %c37 = arith.constant 37 : index
    %31 = vector.load %arg1[%c0_26, %c0_27, %c37] : memref<1x8x450xf32, #tpu.memory_space<vmem>>, vector<1x8x384xf32>
    %32 = vector.shape_cast %31 : vector<1x8x384xf32> to vector<8x384xf32>
    %cst_28 = arith.constant dense<0.000000e+00> : vector<8x384xf32>
    %33 = tpu.matmul %30, %32, %cst_28 {dimension_numbers = #tpu.dot_dimension_numbers<[1], [0], [0], [1], [0, 0, 1, 1], [], []>} : vector<8x8xf32>, vector<8x384xf32>, vector<8x384xf32> -> vector<8x384xf32>
    %34 = arith.addf %28, %33 : vector<8x384xf32>
    %c6 = arith.constant 6 : index
    %c0_29 = arith.constant 0 : index
    %c0_30 = arith.constant 0 : index
    %35 = vector.load %arg2[%c6, %c0_29, %c0_30] : memref<9x8x8xf32, #tpu.memory_space<vmem>>, vector<1x8x8xf32>
    %36 = vector.shape_cast %35 : vector<1x8x8xf32> to vector<8x8xf32>
    %c0_31 = arith.constant 0 : index
    %c0_32 = arith.constant 0 : index
    %c53 = arith.constant 53 : index
    %37 = vector.load %arg1[%c0_31, %c0_32, %c53] : memref<1x8x450xf32, #tpu.memory_space<vmem>>, vector<1x8x384xf32>
    %38 = vector.shape_cast %37 : vector<1x8x384xf32> to vector<8x384xf32>
    %cst_33 = arith.constant dense<0.000000e+00> : vector<8x384xf32>
    %39 = tpu.matmul %36, %38, %cst_33 {dimension_numbers = #tpu.dot_dimension_numbers<[1], [0], [0], [1], [0, 0, 1, 1], [], []>} : vector<8x8xf32>, vector<8x384xf32>, vector<8x384xf32> -> vector<8x384xf32>
    %40 = arith.addf %34, %39 : vector<8x384xf32>
    %c7 = arith.constant 7 : index
    %c0_34 = arith.constant 0 : index
    %c0_35 = arith.constant 0 : index
    %41 = vector.load %arg2[%c7, %c0_34, %c0_35] : memref<9x8x8xf32, #tpu.memory_space<vmem>>, vector<1x8x8xf32>
    %42 = vector.shape_cast %41 : vector<1x8x8xf32> to vector<8x8xf32>
    %c0_36 = arith.constant 0 : index
    %c0_37 = arith.constant 0 : index
    %c54 = arith.constant 54 : index
    %43 = vector.load %arg1[%c0_36, %c0_37, %c54] : memref<1x8x450xf32, #tpu.memory_space<vmem>>, vector<1x8x384xf32>
    %44 = vector.shape_cast %43 : vector<1x8x384xf32> to vector<8x384xf32>
    %cst_38 = arith.constant dense<0.000000e+00> : vector<8x384xf32>
    %45 = tpu.matmul %42, %44, %cst_38 {dimension_numbers = #tpu.dot_dimension_numbers<[1], [0], [0], [1], [0, 0, 1, 1], [], []>} : vector<8x8xf32>, vector<8x384xf32>, vector<8x384xf32> -> vector<8x384xf32>
    %46 = arith.addf %40, %45 : vector<8x384xf32>
    %c8 = arith.constant 8 : index
    %c0_39 = arith.constant 0 : index
    %c0_40 = arith.constant 0 : index
    %47 = vector.load %arg2[%c8, %c0_39, %c0_40] : memref<9x8x8xf32, #tpu.memory_space<vmem>>, vector<1x8x8xf32>
    %48 = vector.shape_cast %47 : vector<1x8x8xf32> to vector<8x8xf32>
    %c0_41 = arith.constant 0 : index
    %c0_42 = arith.constant 0 : index
    %c55 = arith.constant 55 : index
    %49 = vector.load %arg1[%c0_41, %c0_42, %c55] : memref<1x8x450xf32, #tpu.memory_space<vmem>>, vector<1x8x384xf32>
    %50 = vector.shape_cast %49 : vector<1x8x384xf32> to vector<8x384xf32>
    %cst_43 = arith.constant dense<0.000000e+00> : vector<8x384xf32>
    %51 = tpu.matmul %48, %50, %cst_43 {dimension_numbers = #tpu.dot_dimension_numbers<[1], [0], [0], [1], [0, 0, 1, 1], [], []>} : vector<8x8xf32>, vector<8x384xf32>, vector<8x384xf32> -> vector<8x384xf32>
    %52 = arith.addf %46, %51 : vector<8x384xf32>
    %c0_44 = arith.constant 0 : index
    %c0_45 = arith.constant 0 : index
    %53 = vector.load %arg3[%c0_44, %c0_45] : memref<8x1xf32, #tpu.memory_space<vmem>>, vector<8x1xf32>
    %54 = vector.broadcast %53 : vector<8x1xf32> to vector<8x384xf32>
    %55 = arith.addf %52, %54 : vector<8x384xf32>
    %cst_46 = arith.constant 0.000000e+00 : f32
    %56 = vector.broadcast %cst_46 : f32 to vector<8x384xf32>
    %57 = arith.cmpf ogt, %55, %56 : vector<8x384xf32>
    %c0_47 = arith.constant 0 : index
    %c0_48 = arith.constant 0 : index
    %58 = vector.load %arg4[%c0_47, %c0_48] : memref<8x1xf32, #tpu.memory_space<vmem>>, vector<8x1xf32>
    %59 = vector.broadcast %58 : vector<8x1xf32> to vector<8x384xf32>
    %60 = arith.mulf %59, %55 : vector<8x384xf32>
    %61 = arith.select %57, %55, %60 : vector<8x384xi1>, vector<8x384xf32>
    %cst_49 = arith.constant 0.000000e+00 : f32
    %62 = vector.broadcast %cst_49 : f32 to vector<8x128xf32>
    %c0_50 = arith.constant 0 : index
    %c0_51 = arith.constant 0 : index
    %63 = vector.load %arg10[%c0_50, %c0_51] : memref<8x640xf32, #tpu.memory_space<vmem>>, vector<8x128xf32>
    tpu.vector_store %arg10[%c0_50, %c0_51], %62 {strides = array<i32>} : memref<8x640xf32, #tpu.memory_space<vmem>>, vector<8x128xf32>,
    %cst_52 = arith.constant 0.000000e+00 : f32
    %64 = vector.broadcast %cst_52 : f32 to vector<8x128xf32>
    %c0_53 = arith.constant 0 : index
    %c512 = arith.constant 512 : index
    %65 = vector.load %arg10[%c0_53, %c512] : memref<8x640xf32, #tpu.memory_space<vmem>>, vector<8x128xf32>
    tpu.vector_store %arg10[%c0_53, %c512], %64 {strides = array<i32>} : memref<8x640xf32, #tpu.memory_space<vmem>>, vector<8x128xf32>,
    %c0_54 = arith.constant 0 : index
    %c0_55 = arith.constant 0 : index
    %66 = vector.load %arg5[%c0_54, %c0_55] : memref<1x384xf32, #tpu.memory_space<vmem>>, vector<1x384xf32>
    %67 = vector.broadcast %66 : vector<1x384xf32> to vector<8x384xf32>
    %68 = arith.mulf %61, %67 : vector<8x384xf32>
    %c0_56 = arith.constant 0 : index
    %c128 = arith.constant 128 : index
    %69 = vector.load %arg10[%c0_56, %c128] : memref<8x640xf32, #tpu.memory_space<vmem>>, vector<8x384xf32>
    tpu.vector_store %arg10[%c0_56, %c128], %68 {strides = array<i32>} : memref<8x640xf32, #tpu.memory_space<vmem>>, vector<8x384xf32>,
    %c0_57 = arith.constant 0 : index
    %c0_58 = arith.constant 0 : index
    %c0_59 = arith.constant 0 : index
    %70 = vector.load %arg6[%c0_57, %c0_58, %c0_59] : memref<9x8x8xf32, #tpu.memory_space<vmem>>, vector<1x8x8xf32>
    %71 = vector.shape_cast %70 : vector<1x8x8xf32> to vector<8x8xf32>
    %c0_60 = arith.constant 0 : index
    %c109 = arith.constant 109 : index
    %72 = vector.load %arg10[%c0_60, %c109] : memref<8x640xf32, #tpu.memory_space<vmem>>, vector<8x384xf32>
    %cst_61 = arith.constant dense<0.000000e+00> : vector<8x384xf32>
    %73 = tpu.matmul %71, %72, %cst_61 {dimension_numbers = #tpu.dot_dimension_numbers<[1], [0], [0], [1], [0, 0, 1, 1], [], []>} : vector<8x8xf32>, vector<8x384xf32>, vector<8x384xf32> -> vector<8x384xf32>
    %c1_62 = arith.constant 1 : index
    %c0_63 = arith.constant 0 : index
    %c0_64 = arith.constant 0 : index
    %74 = vector.load %arg6[%c1_62, %c0_63, %c0_64] : memref<9x8x8xf32, #tpu.memory_space<vmem>>, vector<1x8x8xf32>
    %75 = vector.shape_cast %74 : vector<1x8x8xf32> to vector<8x8xf32>
    %c0_65 = arith.constant 0 : index
    %c110 = arith.constant 110 : index
    %76 = vector.load %arg10[%c0_65, %c110] : memref<8x640xf32, #tpu.memory_space<vmem>>, vector<8x384xf32>
    %cst_66 = arith.constant dense<0.000000e+00> : vector<8x384xf32>
    %77 = tpu.matmul %75, %76, %cst_66 {dimension_numbers = #tpu.dot_dimension_numbers<[1], [0], [0], [1], [0, 0, 1, 1], [], []>} : vector<8x8xf32>, vector<8x384xf32>, vector<8x384xf32> -> vector<8x384xf32>
    %78 = arith.addf %73, %77 : vector<8x384xf32>
    %c2_67 = arith.constant 2 : index
    %c0_68 = arith.constant 0 : index
    %c0_69 = arith.constant 0 : index
    %79 = vector.load %arg6[%c2_67, %c0_68, %c0_69] : memref<9x8x8xf32, #tpu.memory_space<vmem>>, vector<1x8x8xf32>
    %80 = vector.shape_cast %79 : vector<1x8x8xf32> to vector<8x8xf32>
    %c0_70 = arith.constant 0 : index
    %c111 = arith.constant 111 : index
    %81 = vector.load %arg10[%c0_70, %c111] : memref<8x640xf32, #tpu.memory_space<vmem>>, vector<8x384xf32>
    %cst_71 = arith.constant dense<0.000000e+00> : vector<8x384xf32>
    %82 = tpu.matmul %80, %81, %cst_71 {dimension_numbers = #tpu.dot_dimension_numbers<[1], [0], [0], [1], [0, 0, 1, 1], [], []>} : vector<8x8xf32>, vector<8x384xf32>, vector<8x384xf32> -> vector<8x384xf32>
    %83 = arith.addf %78, %82 : vector<8x384xf32>
    %c3_72 = arith.constant 3 : index
    %c0_73 = arith.constant 0 : index
    %c0_74 = arith.constant 0 : index
    %84 = vector.load %arg6[%c3_72, %c0_73, %c0_74] : memref<9x8x8xf32, #tpu.memory_space<vmem>>, vector<1x8x8xf32>
    %85 = vector.shape_cast %84 : vector<1x8x8xf32> to vector<8x8xf32>
    %c0_75 = arith.constant 0 : index
    %c127 = arith.constant 127 : index
    %86 = vector.load %arg10[%c0_75, %c127] : memref<8x640xf32, #tpu.memory_space<vmem>>, vector<8x384xf32>
    %cst_76 = arith.constant dense<0.000000e+00> : vector<8x384xf32>
    %87 = tpu.matmul %85, %86, %cst_76 {dimension_numbers = #tpu.dot_dimension_numbers<[1], [0], [0], [1], [0, 0, 1, 1], [], []>} : vector<8x8xf32>, vector<8x384xf32>, vector<8x384xf32> -> vector<8x384xf32>
    %88 = arith.addf %83, %87 : vector<8x384xf32>
    %c4_77 = arith.constant 4 : index
    %c0_78 = arith.constant 0 : index
    %c0_79 = arith.constant 0 : index
    %89 = vector.load %arg6[%c4_77, %c0_78, %c0_79] : memref<9x8x8xf32, #tpu.memory_space<vmem>>, vector<1x8x8xf32>
    %90 = vector.shape_cast %89 : vector<1x8x8xf32> to vector<8x8xf32>
    %c0_80 = arith.constant 0 : index
    %c128_81 = arith.constant 128 : index
    %91 = vector.load %arg10[%c0_80, %c128_81] : memref<8x640xf32, #tpu.memory_space<vmem>>, vector<8x384xf32>
    %cst_82 = arith.constant dense<0.000000e+00> : vector<8x384xf32>
    %92 = tpu.matmul %90, %91, %cst_82 {dimension_numbers = #tpu.dot_dimension_numbers<[1], [0], [0], [1], [0, 0, 1, 1], [], []>} : vector<8x8xf32>, vector<8x384xf32>, vector<8x384xf32> -> vector<8x384xf32>
    %93 = arith.addf %88, %92 : vector<8x384xf32>
    %c5_83 = arith.constant 5 : index
    %c0_84 = arith.constant 0 : index
    %c0_85 = arith.constant 0 : index
    %94 = vector.load %arg6[%c5_83, %c0_84, %c0_85] : memref<9x8x8xf32, #tpu.memory_space<vmem>>, vector<1x8x8xf32>
    %95 = vector.shape_cast %94 : vector<1x8x8xf32> to vector<8x8xf32>
    %c0_86 = arith.constant 0 : index
    %c129 = arith.constant 129 : index
    %96 = vector.load %arg10[%c0_86, %c129] : memref<8x640xf32, #tpu.memory_space<vmem>>, vector<8x384xf32>
    %cst_87 = arith.constant dense<0.000000e+00> : vector<8x384xf32>
    %97 = tpu.matmul %95, %96, %cst_87 {dimension_numbers = #tpu.dot_dimension_numbers<[1], [0], [0], [1], [0, 0, 1, 1], [], []>} : vector<8x8xf32>, vector<8x384xf32>, vector<8x384xf32> -> vector<8x384xf32>
    %98 = arith.addf %93, %97 : vector<8x384xf32>
    %c6_88 = arith.constant 6 : index
    %c0_89 = arith.constant 0 : index
    %c0_90 = arith.constant 0 : index
    %99 = vector.load %arg6[%c6_88, %c0_89, %c0_90] : memref<9x8x8xf32, #tpu.memory_space<vmem>>, vector<1x8x8xf32>
    %100 = vector.shape_cast %99 : vector<1x8x8xf32> to vector<8x8xf32>
    %c0_91 = arith.constant 0 : index
    %c145 = arith.constant 145 : index
    %101 = vector.load %arg10[%c0_91, %c145] : memref<8x640xf32, #tpu.memory_space<vmem>>, vector<8x384xf32>
    %cst_92 = arith.constant dense<0.000000e+00> : vector<8x384xf32>
    %102 = tpu.matmul %100, %101, %cst_92 {dimension_numbers = #tpu.dot_dimension_numbers<[1], [0], [0], [1], [0, 0, 1, 1], [], []>} : vector<8x8xf32>, vector<8x384xf32>, vector<8x384xf32> -> vector<8x384xf32>
    %103 = arith.addf %98, %102 : vector<8x384xf32>
    %c7_93 = arith.constant 7 : index
    %c0_94 = arith.constant 0 : index
    %c0_95 = arith.constant 0 : index
    %104 = vector.load %arg6[%c7_93, %c0_94, %c0_95] : memref<9x8x8xf32, #tpu.memory_space<vmem>>, vector<1x8x8xf32>
    %105 = vector.shape_cast %104 : vector<1x8x8xf32> to vector<8x8xf32>
    %c0_96 = arith.constant 0 : index
    %c146 = arith.constant 146 : index
    %106 = vector.load %arg10[%c0_96, %c146] : memref<8x640xf32, #tpu.memory_space<vmem>>, vector<8x384xf32>
    %cst_97 = arith.constant dense<0.000000e+00> : vector<8x384xf32>
    %107 = tpu.matmul %105, %106, %cst_97 {dimension_numbers = #tpu.dot_dimension_numbers<[1], [0], [0], [1], [0, 0, 1, 1], [], []>} : vector<8x8xf32>, vector<8x384xf32>, vector<8x384xf32> -> vector<8x384xf32>
    %108 = arith.addf %103, %107 : vector<8x384xf32>
    %c8_98 = arith.constant 8 : index
    %c0_99 = arith.constant 0 : index
    %c0_100 = arith.constant 0 : index
    %109 = vector.load %arg6[%c8_98, %c0_99, %c0_100] : memref<9x8x8xf32, #tpu.memory_space<vmem>>, vector<1x8x8xf32>
    %110 = vector.shape_cast %109 : vector<1x8x8xf32> to vector<8x8xf32>
    %c0_101 = arith.constant 0 : index
    %c147 = arith.constant 147 : index
    %111 = vector.load %arg10[%c0_101, %c147] : memref<8x640xf32, #tpu.memory_space<vmem>>, vector<8x384xf32>
    %cst_102 = arith.constant dense<0.000000e+00> : vector<8x384xf32>
    %112 = tpu.matmul %110, %111, %cst_102 {dimension_numbers = #tpu.dot_dimension_numbers<[1], [0], [0], [1], [0, 0, 1, 1], [], []>} : vector<8x8xf32>, vector<8x384xf32>, vector<8x384xf32> -> vector<8x384xf32>
    %113 = arith.addf %108, %112 : vector<8x384xf32>
    %c0_103 = arith.constant 0 : index
    %c0_104 = arith.constant 0 : index
    %114 = vector.load %arg7[%c0_103, %c0_104] : memref<8x1xf32, #tpu.memory_space<vmem>>, vector<8x1xf32>
    %115 = vector.broadcast %114 : vector<8x1xf32> to vector<8x384xf32>
    %116 = arith.addf %113, %115 : vector<8x384xf32>
    %cst_105 = arith.constant 0.000000e+00 : f32
    %117 = vector.broadcast %cst_105 : f32 to vector<8x384xf32>
    %118 = arith.cmpf ogt, %116, %117 : vector<8x384xf32>
    %c0_106 = arith.constant 0 : index
    %c0_107 = arith.constant 0 : index
    %119 = vector.load %arg8[%c0_106, %c0_107] : memref<8x1xf32, #tpu.memory_space<vmem>>, vector<8x1xf32>
    %120 = vector.broadcast %119 : vector<8x1xf32> to vector<8x384xf32>
    %121 = arith.mulf %120, %116 : vector<8x384xf32>
    %122 = arith.select %118, %116, %121 : vector<8x384xi1>, vector<8x384xf32>
    %c0_108 = arith.constant 0 : index
    %c0_109 = arith.constant 0 : index
    %c0_110 = arith.constant 0 : index
    %123 = vector.load %arg9[%c0_108, %c0_109, %c0_110] : memref<1x8x384xf32, #tpu.memory_space<vmem>>, vector<1x8x384xf32>
    %124 = vector.shape_cast %123 : vector<1x8x384xf32> to vector<8x384xf32>
    %125 = vector.shape_cast %122 : vector<8x384xf32> to vector<1x8x384xf32>
    tpu.vector_store %arg9[%c0_108, %c0_109, %c0_110], %125 {strides = array<i32>} : memref<1x8x384xf32, #tpu.memory_space<vmem>>, vector<1x8x384xf32>,
    return
  }
  func.func @transform_0(%arg0: i32) -> (i32, i32, i32) {
    %c0_i32 = arith.constant 0 : i32
    %c0_i32_0 = arith.constant 0 : i32
    %c0_i32_1 = arith.constant 0 : i32
    return %arg0, %c0_i32, %c0_i32_0 : i32, i32, i32
  }
  func.func @transform_1(%arg0: i32) -> (i32, i32, i32) {
    %c0_i32 = arith.constant 0 : i32
    %c0_i32_0 = arith.constant 0 : i32
    %c0_i32_1 = arith.constant 0 : i32
    %c0_i32_2 = arith.constant 0 : i32
    return %c0_i32, %c0_i32_0, %c0_i32_1 : i32, i32, i32
  }
  func.func @transform_2(%arg0: i32) -> (i32, i32) {
    %c0_i32 = arith.constant 0 : i32
    %c0_i32_0 = arith.constant 0 : i32
    %c0_i32_1 = arith.constant 0 : i32
    return %c0_i32, %c0_i32_0 : i32, i32
  }
  func.func @transform_3(%arg0: i32) -> (i32, i32) {
    %c0_i32 = arith.constant 0 : i32
    %c0_i32_0 = arith.constant 0 : i32
    %c0_i32_1 = arith.constant 0 : i32
    return %c0_i32, %c0_i32_0 : i32, i32
  }
  func.func @transform_4(%arg0: i32) -> (i32, i32) {
    %c0_i32 = arith.constant 0 : i32
    %c0_i32_0 = arith.constant 0 : i32
    %c0_i32_1 = arith.constant 0 : i32
    return %c0_i32, %c0_i32_0 : i32, i32
  }
  func.func @transform_5(%arg0: i32) -> (i32, i32, i32) {
    %c0_i32 = arith.constant 0 : i32
    %c0_i32_0 = arith.constant 0 : i32
    %c0_i32_1 = arith.constant 0 : i32
    %c0_i32_2 = arith.constant 0 : i32
    return %c0_i32, %c0_i32_0, %c0_i32_1 : i32, i32, i32
  }
  func.func @transform_6(%arg0: i32) -> (i32, i32) {
    %c0_i32 = arith.constant 0 : i32
    %c0_i32_0 = arith.constant 0 : i32
    %c0_i32_1 = arith.constant 0 : i32
    return %c0_i32, %c0_i32_0 : i32, i32
  }
  func.func @transform_7(%arg0: i32) -> (i32, i32) {
    %c0_i32 = arith.constant 0 : i32
    %c0_i32_0 = arith.constant 0 : i32
    %c0_i32_1 = arith.constant 0 : i32
    return %c0_i32, %c0_i32_0 : i32, i32
  }
  func.func @transform_8(%arg0: i32) -> (i32, i32, i32) {
    %c0_i32 = arith.constant 0 : i32
    %c0_i32_0 = arith.constant 0 : i32
    %c0_i32_1 = arith.constant 0 : i32
    return %arg0, %c0_i32, %c0_i32_0 : i32, i32, i32
  }
}

</mosaic_0001>

<bundles_post_ra>
// kernel: tpu_custom_call.1
= control target key start
LH: loop header
LB: loop body
LE: loop exit
PB: predicated region body
PF: predicated region fallthrough
CT: control target
= control target key end

     0   :  { %13 = vsyncpa [#allocation4], 0  ;;  %s4265_s0 = inlined_call_operand.vmem [shape: f32[2,8,450], index: 0, kind: input, shape index: {}]   ;;  %s4266_s1 = inlined_call_operand.vmem [shape: f32[9,8,8], index: 1, kind: input, shape index: {}]   ;;  %s4267_s2 = inlined_call_operand.vmem [shape: f32[8,1], index: 2, kind: input, shape index: {}]   ;;  %s4268_s3 = inlined_call_operand.vmem [shape: f32[8,1], index: 3, kind: input, shape index: {}]   ;;  %s4269_s4 = inlined_call_operand.vmem [shape: f32[1,384], index: 4, kind: input, shape index: {}]   ;;  %s4270_s5 = inlined_call_operand.vmem [shape: f32[9,8,8], index: 5, kind: input, shape index: {}]   ;;  %s4271_s6 = inlined_call_operand.vmem [shape: f32[8,1], index: 6, kind: input, shape index: {}]   ;;  %s4272_s7 = inlined_call_operand.vmem [shape: f32[8,1], index: 7, kind: input, shape index: {}]   ;;  %s4273_s8 = inlined_call_operand.hbm [shape: f32[2,8,384], index: 8, kind: output, shape index: {}]  }
   0x1   :  { %15 = vsyncpa [#allocation4 + $0x1], 0  ;;  %s3806_s27 = smov 0   ;;  %s3808_s28 = smov 0  }
   0x2   :  { %s3810_s29 = smov 0   ;;  %s3812_s30 = smov 0  }
   0x3 LB: > { %s3827_s9 = sadd.s32 4294967295, %s3741_s30   ;;  %s3399_s10 = sadd.s32 4294967294, %s3741_s30   ;;  %s3741_s30 = sphi %s3812_s30, %s4279_s30   ;;  %s3737_s29 = sphi %s3810_s29, %s4278_s29   ;;  %s3733_s28 = sphi %s3808_s28, %s4277_s28   ;;  %s3729_s27 = sphi %s3806_s27, %s4276_s27  }
   0x4   : > { %s3831_s11 = sadd.s32 1, %s3741_s30   ;;  %s201_s12 = sadd.s32 1, %s3737_s29 }
   0x5   : > { %s198_s13 = ssub.s32 %s3741_s30, %s3831_s11  ;;  %p211_p0 = scmp.ne.s32.totalorder %s3737_s29, %s3733_s28 }
   0x6   : > { %p199_p1 = scmp.eq.s32.totalorder %s198_s13, 0  ;;  %p212_p2 = scmp.eq.s32.totalorder %s3827_s9, 1 }
   0x7   : > { %p217_p3 = scmp.ne.s32.totalorder %s3733_s28, %s3729_s27  ;;  %p218_p4 = scmp.eq.s32.totalorder %s3399_s10, 1 }
   0x8   : > { %s3842_s14 = scalar_select %p199_p1, %s3737_s29, %s201_s12  }
   0x9   : > { %p3844_p5 = por %p212_p2, %p211_p0  ;;  %p3848_p6 = por %p218_p4, %p217_p3 }
   0xa   : > { %p3402_p7 = scmp.ge.s32.totalorder %s3741_s30, 1  ;;  %p265_p8 = scmp.lt.s32.totalorder %s3741_s30, 3 }
   0xc   : > { %p266_p9 = pnand %p3402_p7, %p265_p8 }
   0xd   : > { %p299_p10 = scmp.lt.s32.totalorder (!%p266_p9), %s3827_s9, 1  ;;  %v3743_v0 = vmov (!%p266_p9), 0.0   ;;  %s3744_s22 = smov (!%p266_p9), 110   ;;  %vm3752_vm0 = vmmov (!%p266_p9), 0   ;;  %v1782_v5 = vld [vmem:[%s4267_s2] sm:$0xff] (!%p266_p9)  ;;  %v3754_v7 = vmov (!%p266_p9), 0  }
   0xe   : > { %269 = sbr.rel (%p266_p9) target bundleno = 848 (0x350), region = 52  ;;  %398 = vmatprep.mubr.f32.mxu0 (!%p266_p9), %v3743_v0  ;;  %3497 = vmatprep.subr.mxu1 (!%p266_p9), %v3743_v0  ;;  %s3745_s23 = smov (!%p266_p9), 111   ;;  %v1794_v6 = vld [vmem:[%s4268_s3] sm:$0xff] (!%p266_p9)  ;;  %vm323_vm1 = vcmask (!%p266_p9), 900096   ;;  %v3898_v13 = vld [vmem:[%s4266_s1 + $0x8] sm:$0xff] (!%p266_p9)  ;;  %vm330_vm2 = vcmask (!%p266_p9), 64512  }
   0xf   : > { %s3746_s24 = smov (!%p266_p9), 109   ;;  %s3747_s25 = smov (!%p266_p9), 93   ;;  %3499 = vmatprep.mubr.msk.f32.mxu1 (!%p266_p9), %vm3752_vm0, %v3743_v0  ;;  %3677 = vset.pattern.permute.xlu0 (!%p266_p9), %v3754_v7  ;;  %vm483_vm3 = vcmask (!%p266_p9), 908288   ;;  %vm644_vm4 = vcmask (!%p266_p9), 891904   ;;  %v3914_v21 = vld [vmem:[%s4266_s1] sm:$0xff] (!%p266_p9)  ;;  %vm808_vm5 = vcmask (!%p266_p9), 760832  }
  0x10   : > { %s3748_s26 = smov (!%p266_p9), 92   ;;  %s3749_s10 = smov (!%p266_p9), 91   ;;  %3678 = vset.pattern.permute.xlu1 (!%p266_p9), %v3754_v7  ;;  %v3929_v29 = vld [vmem:[%s4266_s1 + $0x10] sm:$0xff] (!%p266_p9)  ;;  %vm972_vm6 = vcmask (!%p266_p9), 752640   ;;  %v3942_v36 = vld [vmem:[%s4266_s1 + $0x18] sm:$0xff] (!%p266_p9)  ;;  %vm1136_vm7 = vcmask (!%p266_p9), 744448  }
  0x11   : > { %s3750_s12 = smov (!%p266_p9), 75   ;;  %s3751_s13 = smov (!%p266_p9), 74   ;;  %vm1300_vm8 = vcmask (!%p266_p9), 613376   ;;  %v3957_v43 = vld [vmem:[%s4266_s1 + $0x20] sm:$0xff] (!%p266_p9)  ;;  %vm1464_vm9 = vcmask (!%p266_p9), 605184   ;;  %v3970_v50 = vld [vmem:[%s4266_s1 + $0x28] sm:$0xff] (!%p266_p9) }
  0x12   : > { %vm1628_vm10 = vcmask (!%p266_p9), 596992   ;;  %v3422_v58 = vld [vmem:[%s4266_s1 + $0x30] sm:$0xff] (!%p266_p9)  ;;  %vm1850_vm14 = vcmask (!%p266_p9), 146432   ;;  %vm2009_vm15 = vcmask (!%p266_p9), 154624   ;;  %s3760_s20 = smov (!%p266_p9), [#allocation3]  }
  0x15   : > { %s300_s17 = scalar_select %p299_p10, %s3827_s9, 1 }
  0x17   : > { %s3460_s18 = sshll.u32 %s300_s17, 5  ;;  %s3753_s17 = smov 73  }
  0x18   : > { %s3861_s21 = scalar_lea.vmem %s4265_s0, %s3460_s18 }
  0x19   : > { %v306_v1 = vld [vmem:[%s3861_s21 + $0x8] sm:$0xff]  ;;  %v305_v2 = vld [vmem:[%s3861_s21] sm:$0xff]  ;;  %v307_v3 = vld [vmem:[%s3861_s21 + $0x10] sm:$0xff] }
  0x1a   : > { %317 = vrot.lane.b32.xlu0 %v306_v1, %s3744_s22  ;;  %315 = vrot.lane.b32.xlu1 %v305_v2, %s3744_s22  ;;  %v308_v4 = vld [vmem:[%s3861_s21 + $0x18] sm:$0xff] }
  0x1e   : > { %319 = vrot.lane.b32.xlu0 %v307_v3, %s3744_s22  ;;  %477 = vrot.lane.b32.xlu1 %v306_v1, %s3745_s23 }
  0x22   : > { %479 = vrot.lane.b32.xlu0 %v307_v3, %s3745_s23  ;;  %475 = vrot.lane.b32.xlu1 %v305_v2, %s3745_s23 }
  0x26   : > { %638 = vrot.lane.b32.xlu0 %v306_v1, %s3746_s24  ;;  %640 = vrot.lane.b32.xlu1 %v307_v3, %s3746_s24 }
  0x2a   : > { %636 = vrot.lane.b32.xlu0 %v305_v2, %s3746_s24  ;;  %802 = vrot.lane.b32.xlu1 %v306_v1, %s3747_s25 }
  0x2e   : > { %804 = vrot.lane.b32.xlu0 %v307_v3, %s3747_s25  ;;  %800 = vrot.lane.b32.xlu1 %v305_v2, %s3747_s25 }
  0x32   : > { %966 = vrot.lane.b32.xlu0 %v306_v1, %s3748_s26  ;;  %968 = vrot.lane.b32.xlu1 %v307_v3, %s3748_s26 }
  0x36   : > { %964 = vrot.lane.b32.xlu0 %v305_v2, %s3748_s26  ;;  %1130 = vrot.lane.b32.xlu1 %v306_v1, %s3749_s10 }
  0x3a   : > { %1132 = vrot.lane.b32.xlu0 %v307_v3, %s3749_s10  ;;  %1128 = vrot.lane.b32.xlu1 %v305_v2, %s3749_s10 }
  0x3e   : > { %1294 = vrot.lane.b32.xlu0 %v306_v1, %s3750_s12  ;;  %1296 = vrot.lane.b32.xlu1 %v307_v3, %s3750_s12 }
  0x42   : > { %1292 = vrot.lane.b32.xlu0 %v305_v2, %s3750_s12  ;;  %1458 = vrot.lane.b32.xlu1 %v306_v1, %s3751_s13 }
  0x46   : > { %1460 = vrot.lane.b32.xlu0 %v307_v3, %s3751_s13  ;;  %1456 = vrot.lane.b32.xlu1 %v305_v2, %s3751_s13 }
  0x4a   : > { %321 = vrot.lane.b32.xlu0 %v308_v4, %s3744_s22  ;;  %1622 = vrot.lane.b32.xlu1 %v306_v1, %s3753_s17 }
  0x4e   : > { %1624 = vrot.lane.b32.xlu0 %v307_v3, %s3753_s17  ;;  %1620 = vrot.lane.b32.xlu1 %v305_v2, %s3753_s17 }
  0x52   : > { %481 = vrot.lane.b32.xlu0 %v308_v4, %s3745_s23  ;;  %642 = vrot.lane.b32.xlu1 %v308_v4, %s3746_s24 }
  0x56   : > { %806 = vrot.lane.b32.xlu0 %v308_v4, %s3747_s25  ;;  %970 = vrot.lane.b32.xlu1 %v308_v4, %s3748_s26  ;;  %s3755_s25 = smov 18   ;;  %s3756_s26 = smov 19  }
  0x5a   : > { %1134 = vrot.lane.b32.xlu0 %v308_v4, %s3749_s10  ;;  %1298 = vrot.lane.b32.xlu1 %v308_v4, %s3750_s12  ;;  %s3757_s10 = smov 17   ;;  %s3758_s12 = smov 1  }
  0x5e   : > { %1462 = vrot.lane.b32.xlu0 %v308_v4, %s3751_s13  ;;  %1626 = vrot.lane.b32.xlu1 %v308_v4, %s3753_s17  ;;  %v3425_v4 = vld [vmem:[%s4266_s1 + $0x38] sm:$0xff]  ;;  %s3759_s13 = smov 127  }
  0x62   : > { %1785 = vperm.xlu0 %3677, %v1782_v5   ;;  %1797 = vperm.xlu1 %3678, %v1794_v6  }
  0x8c   : > { %v318_v8 = vpop.permute.xlu0 %317  ;;  %v316_v9 = vpop.permute.xlu1 %315 }
  0x8d   : > { %v324_v14 = vsel %vm323_vm1, %v316_v9, %v318_v8  ;;  %v3428_v9 = vld [vmem:[%s4266_s1 + $0x40] sm:$0xff] }
  0x90   : > { %v3891_v10 = vpop.permute.xlu0 %319  ;;  %v478_v11 = vpop.permute.xlu1 %477 }
  0x91   : > { %v325_v12 = vsel %vm323_vm1, %v318_v8, %v3891_v10 }
  0x92   : > { %334 = vmatprep.subr.mxu0 %v325_v12 }
  0x93   : > { %335 = vmatpush1.msra.mxu0 %v324_v14 }
  0x94   : > { %v3901_v15 = vpop.permute.xlu0 %479  ;;  %3406 = vmatmul.mubr.msk.f32.vlgmr.msra.gmra.mrb[0].mxu0 %vm330_vm2, %v3898_v13  ;;  %v476_v16 = vpop.permute.xlu1 %475 }
  0x95   : > { %v484_v17 = vsel %vm483_vm3, %v476_v16, %v478_v11  ;;  %v485_v18 = vsel %vm483_vm3, %v478_v11, %v3901_v15  ;;  %557 = vmatprep.mubr.f32.mxu0 %v3743_v0 }
  0x96   : > { %493 = vmatprep.subr.mxu0 %v485_v18 }
  0x97   : > { %494 = vmatpush1.msra.mxu0 %v484_v17 }
  0x98   : > { %v639_v19 = vpop.permute.xlu0 %638  ;;  %v3909_v20 = vpop.permute.xlu1 %640 }
  0x99   : > { %v646_v22 = vsel %vm644_vm4, %v639_v19, %v3909_v20 }
  0x9a   : > { %654 = vmatprep.subr.mxu0 %v646_v22  ;;  %v1810_v22 = vlaneseq }
  0x9c   : > { %v637_v23 = vpop.permute.xlu0 %636  ;;  %3408 = vmatmul.mubr.msk.f32.vlgmr.msra.gmra.mrb[0].mxu0 %vm330_vm2, %v3914_v21  ;;  %v803_v24 = vpop.permute.xlu1 %802 }
  0x9d   : > { %v645_v25 = vsel %vm644_vm4, %v637_v23, %v639_v19  ;;  %718 = vmatprep.mubr.f32.mxu0 %v3743_v0 }
  0x9e   : > { %655 = vmatpush1.msra.mxu0 %v645_v25 }
  0xa0   : > { %v3922_v26 = vpop.permute.xlu0 %804  ;;  %v801_v27 = vpop.permute.xlu1 %800 }
  0xa1   : > { %v810_v28 = vsel %vm808_vm5, %v803_v24, %v3922_v26  ;;  %v809_v30 = vsel %vm808_vm5, %v801_v27, %v803_v24 }
  0xa2   : > { %818 = vmatprep.subr.mxu0 %v810_v28 }
  0xa4   : > { %v967_v31 = vpop.permute.xlu0 %966  ;;  %3411 = vmatmul.mubr.msk.f32.vlgmr.msra.gmra.mrb[0].mxu0 %vm330_vm2, %v3929_v29  ;;  %v3934_v32 = vpop.permute.xlu1 %968 }
  0xa5   : > { %819 = vmatpush1.msra.mxu0 %v809_v30  ;;  %882 = vmatprep.mubr.f32.mxu0 %v3743_v0  ;;  %v974_v33 = vsel %vm972_vm6, %v967_v31, %v3934_v32 }
  0xa6   : > { %982 = vmatprep.subr.mxu0 %v974_v33  ;;  %v1808_v33 = vld [vmem:[%s4269_s4] sm:$0x7] }
  0xa8   : > { %v965_v34 = vpop.permute.xlu0 %964  ;;  %v1131_v35 = vpop.permute.xlu1 %1130 }
  0xa9   : > { %v973_v37 = vsel %vm972_vm6, %v965_v34, %v967_v31 }
  0xac   : > { %v3945_v38 = vpop.permute.xlu0 %1132  ;;  %3414 = vmatmul.mubr.msk.f32.vlgmr.msra.gmra.mrb[0].mxu0 %vm330_vm2, %v3942_v36  ;;  %v1129_v39 = vpop.permute.xlu1 %1128 }
  0xad   : > { %983 = vmatpush1.msra.mxu0 %v973_v37  ;;  %1046 = vmatprep.mubr.f32.mxu0 %v3743_v0  ;;  %v1138_v40 = vsel %vm1136_vm7, %v1131_v35, %v3945_v38  ;;  %v1137_v44 = vsel %vm1136_vm7, %v1129_v39, %v1131_v35 }
  0xae   : > { %1146 = vmatprep.subr.mxu0 %v1138_v40 }
  0xb0   : > { %v1295_v41 = vpop.permute.xlu0 %1294  ;;  %v3952_v42 = vpop.permute.xlu1 %1296 }
  0xb1   : > { %v1302_v45 = vsel %vm1300_vm8, %v1295_v41, %v3952_v42 }
  0xb4   : > { %v1293_v46 = vpop.permute.xlu0 %1292  ;;  %3417 = vmatmul.mubr.msk.f32.vlgmr.msra.gmra.mrb[0].mxu0 %vm330_vm2, %v3957_v43  ;;  %v1459_v47 = vpop.permute.xlu1 %1458 }
  0xb5   : > { %1147 = vmatpush1.msra.mxu0 %v1137_v44  ;;  %1210 = vmatprep.mubr.f32.mxu0 %v3743_v0  ;;  %v1301_v51 = vsel %vm1300_vm8, %v1293_v46, %v1295_v41 }
  0xb6   : > { %1310 = vmatprep.subr.mxu0 %v1302_v45 }
  0xb8   : > { %v3965_v48 = vpop.permute.xlu0 %1460  ;;  %v1457_v49 = vpop.permute.xlu1 %1456 }
  0xb9   : > { %v1466_v52 = vsel %vm1464_vm9, %v1459_v47, %v3965_v48  ;;  %v1465_v59 = vsel %vm1464_vm9, %v1457_v49, %v1459_v47 }
  0xbc   : > { %v322_v53 = vpop.permute.xlu0 %321  ;;  %3420 = vmatmul.mubr.msk.f32.vlgmr.msra.gmra.mrb[0].mxu0 %vm330_vm2, %v3970_v50  ;;  %v1623_v54 = vpop.permute.xlu1 %1622 }
  0xbd   : > { %1311 = vmatpush1.msra.mxu0 %v1301_v51  ;;  %v326_v55 = vsel %vm323_vm1, %v3891_v10, %v322_v53  ;;  %1374 = vmatprep.mubr.f32.mxu0 %v3743_v0 }
  0xbe   : > { %3498 = vmatpush3.msra.mxu1 %v326_v55  ;;  %1474 = vmatprep.subr.mxu0 %v1466_v52 }
  0xbf   : > { %3500 = vmatmul.mubr.msk.f32.vlgmr.msra.gmra.mrb[0].mxu1 %vm330_vm2, %v3898_v13  ;;  %3502 = vmatprep.subr.mxu1 %v3743_v0 }
  0xc0   : > { %v1625_v56 = vpop.permute.xlu0 %1624  ;;  %v1621_v57 = vpop.permute.xlu1 %1620  ;;  %3504 = vmatprep.mubr.msk.f32.mxu1 %vm3752_vm0, %v3743_v0 }
  0xc1   : > { %v1630_v60 = vsel %vm1628_vm10, %v1623_v54, %v1625_v56  ;;  %v1629_v5 = vsel %vm1628_vm10, %v1621_v57, %v1623_v54 }
  0xc4   : > { %v482_v61 = vpop.permute.xlu0 %481  ;;  %3423 = vmatmul.mubr.msk.f32.vlgmr.msra.gmra.mrb[0].mxu0 %vm330_vm2, %v3422_v58  ;;  %v643_v62 = vpop.permute.xlu1 %642 }
  0xc5   : > { %v486_v63 = vsel %vm483_vm3, %v3901_v15, %v482_v61  ;;  %1475 = vmatpush1.msra.mxu0 %v1465_v59  ;;  %1538 = vmatprep.mubr.f32.mxu0 %v3743_v0  ;;  %v647_v1 = vsel %vm644_vm4, %v3909_v20, %v643_v62 }
  0xc6   : > { %3503 = vmatpush3.msra.mxu1 %v486_v63  ;;  %1638 = vmatprep.subr.mxu0 %v1630_v60 }
  0xc7   : > { %3505 = vmatmul.mubr.msk.f32.vlgmr.msra.gmra.mrb[2].mxu1 %vm330_vm2, %v3914_v21  ;;  %3507 = vmatprep.subr.mxu1 %v3743_v0 }
  0xc8   : > { %v807_v2 = vpop.permute.xlu0 %806  ;;  %3508 = vmatpush3.msra.mxu1 %v647_v1  ;;  %3509 = vmatprep.mubr.msk.f32.mxu1 %vm3752_vm0, %v3743_v0  ;;  %v971_v6 = vpop.permute.xlu1 %970 }
  0xc9   : > { %v811_v3 = vsel %vm808_vm5, %v3922_v26, %v807_v2  ;;  %3512 = vmatprep.subr.mxu1 %v3743_v0  ;;  %v975_v7 = vsel %vm972_vm6, %v3934_v32, %v971_v6  ;;  %v1811_v26 = vshrl.u32 %v1810_v22, 7  ;;  %v3310_v6 = vld [vmem:[%s4272_s7] sm:$0xff]  ;;  %vm2170_vm5 = vcmask 138240  }
  0xca   : > { %vm2334_vm6 = vcmask 7168  }
  0xcb   : > { %3510 = vmatmul.mubr.msk.f32.vlgmr.msra.gmra.mrb[4].mxu1 %vm330_vm2, %v3929_v29  ;;  %v1812_v31 = vsub.s32 0, %v1811_v26  ;;  %v1816_v34 = vsub.s32 1, %v1811_v26  ;;  %v1820_v63 = vsub.s32 2, %v1811_v26  ;;  %v3436_v26 = vld [vmem:[%s4270_s5 + $0x10] sm:$0xff] }
  0xcc   : > { %3513 = vmatpush3.msra.mxu1 %v811_v3  ;;  %3426 = vmatmul.mubr.msk.f32.vlgmr.msra.gmra.mrb[0].mxu0 %vm330_vm2, %v3425_v4  ;;  %v1135_v8 = vpop.permute.xlu0 %1134  ;;  %v1299_v11 = vpop.permute.xlu1 %1298 }
  0xcd   : > { %1639 = vmatpush1.msra.mxu0 %v1629_v5  ;;  %3514 = vmatprep.mubr.msk.f32.mxu1 %vm3752_vm0, %v3743_v0  ;;  %v1139_v10 = vsel %vm1136_vm7, %v3945_v38, %v1135_v8  ;;  %v1303_v12 = vsel %vm1300_vm8, %v3952_v42, %v1299_v11  ;;  %v1813_v42 = vrot.slane %v1808_v33, %v1812_v31  ;;  %v3298_v5 = vld [vmem:[%s4271_s6] sm:$0xff]  ;;  %v3431_v11 = vld [vmem:[%s4270_s5 + $0x8] sm:$0xff]  ;;  %vm2655_vm7 = vcmask 1039360  }
  0xce   : > { %3517 = vmatprep.subr.mxu1 %v3743_v0  ;;  %1702 = vmatprep.mubr.f32.mxu0 %v3743_v0  ;;  %v1821_v2 = vrot.slane %v1808_v33, %v1820_v63 }
  0xcf   : > { %3515 = vmatmul.mubr.msk.f32.vlgmr.msra.gmra.mrb[6].mxu1 %vm330_vm2, %v3942_v36 }
  0xd0   : > { %3518 = vmatpush3.msra.mxu1 %v975_v7  ;;  %3519 = vmatprep.mubr.msk.f32.mxu1 %vm3752_vm0, %v3743_v0  ;;  %v1463_v13 = vpop.permute.xlu0 %1462  ;;  %v1627_v15 = vpop.permute.xlu1 %1626 }
  0xd1   : > { %3522 = vmatprep.subr.mxu1 %v3743_v0  ;;  %v1467_v14 = vsel %vm1464_vm9, %v3965_v48, %v1463_v13  ;;  %v1631_v16 = vsel %vm1628_vm10, %v1625_v56, %v1627_v15 }
  0xd3   : > { %3520 = vmatmul.mubr.msk.f32.vlgmr.msra.gmra.mrb[8].mxu1 %vm330_vm2, %v3957_v43  ;;  %v1817_v43 = vrot.slane %v1808_v33, %v1816_v34 }
  0xd4   : > { %3523 = vmatpush3.msra.mxu1 %v1139_v10  ;;  %3429 = vmatmul.mubr.msk.f32.vlgmr.msra.gmra.mrb[0].mxu0 %vm330_vm2, %v3428_v9 }
  0xd5   : > { %3524 = vmatprep.mubr.msk.f32.mxu1 %vm3752_vm0, %v3743_v0  ;;  %3527 = vmatprep.subr.mxu1 %v3743_v0 }
  0xd6   : > { %1924 = vmatprep.mubr.f32.mxu0 %v3743_v0 }
  0xd7   : > { %3525 = vmatmul.mubr.msk.f32.vlgmr.msra.gmra.mrb[10].mxu1 %vm330_vm2, %v3970_v50 }
  0xd8   : > { %3528 = vmatpush3.msra.mxu1 %v1303_v12  ;;  %3529 = vmatprep.mubr.msk.f32.mxu1 %vm3752_vm0, %v3743_v0 }
  0xd9   : > { %3532 = vmatprep.subr.mxu1 %v3743_v0 }
  0xdb   : > { %3530 = vmatmul.mubr.msk.f32.vlgmr.msra.gmra.mrb[12].mxu1 %vm330_vm2, %v3422_v58 }
  0xdc   : > { %3533 = vmatpush3.msra.mxu1 %v1467_v14  ;;  %3534 = vmatprep.mubr.msk.f32.mxu1 %vm3752_vm0, %v3743_v0 }
  0xdd   : > { %3537 = vmatprep.subr.mxu1 %v3743_v0 }
  0xdf   : > { %3535 = vmatmul.mubr.msk.f32.vlgmr.msra.gmra.mrb[14].mxu1 %vm330_vm2, %v3425_v4 }
  0xe0   : > { %3538 = vmatpush3.msra.mxu1 %v1631_v16  ;;  %3539 = vmatprep.mubr.msk.f32.mxu1 %vm3752_vm0, %v3743_v0 }
  0xe1   : > { %3542 = vmatprep.subr.mxu1 %v3743_v0  ;;  %v1786_v30 = vpop.permute.xlu0 %1785  ;;  %v1798_v35 = vpop.permute.xlu1 %1797 }
  0xe3   : > { %3540 = vmatmul.mubr.msk.f32.vlgmr.msra.gmra.mrb[16].mxu1 %vm330_vm2, %v3428_v9 }
  0xe4   : > { %3544 = vmatprep.mubr.msk.f32.mxu1 %vm3752_vm0, %v3743_v0 }
 0x192   : > { %v471_v17 = vpop.f32.mrb[0].mxu1 }
 0x193   : > { %v3501_v18 = vpop.f32.mrb[1].mxu1 }
 0x19a   : > { %v630_v19 = vpop.f32.mrb[2].mxu1 }
 0x19b   : > { %v631_v20 = vadd.f32 %v630_v19, %v471_v17  ;;  %v3506_v21 = vpop.f32.mrb[3].mxu1  ;;  %v1831_v19 = vld [vmem:[%s4270_s5] sm:$0xff] }
 0x19e   : > { %v791_v23 = vpop.f32.mrb[4].mxu1 }
 0x19f   : > { %v797_v24 = vadd.f32 %v791_v23, %v631_v20  ;;  %v3511_v25 = vpop.f32.mrb[5].mxu1 }
 0x1a2   : > { %v955_v27 = vpop.f32.mrb[6].mxu1 }
 0x1a3   : > { %v961_v28 = vadd.f32 %v955_v27, %v797_v24  ;;  %v3516_v29 = vpop.f32.mrb[7].mxu1 }
 0x1a6   : > { %v1119_v32 = vpop.f32.mrb[8].mxu1 }
 0x1a7   : > { %v1125_v36 = vadd.f32 %v1119_v32, %v961_v28  ;;  %v1704_v37 = vpop.f32.mrb[0].mxu0  ;;  %v3521_v38 = vpop.f32.mrb[9].mxu1 }
 0x1a8   : > { %v1788_v39 = vadd.f32 %v1786_v30, %v1704_v37  ;;  %v1706_v40 = vpop.f32.mrb[1].mxu0 }
 0x1a9   : > { %v1789_v41 = vadd.f32 %v1786_v30, %v1706_v40 }
 0x1aa   : > { %vm1791_vm11 = vcmp.gt.f32.partialorder %v1788_v39, 0.0  ;;  %v1800_v44 = vmul.f32 %v1798_v35, %v1788_v39  ;;  %v1283_v45 = vpop.f32.mrb[10].mxu1 }
 0x1ab   : > { %vm1792_vm12 = vcmp.gt.f32.partialorder %v1789_v41, 0.0  ;;  %v1801_v46 = vmul.f32 %v1798_v35, %v1789_v41  ;;  %v1289_v47 = vadd.f32 %v1283_v45, %v1125_v36  ;;  %v3526_v48 = vpop.f32.mrb[11].mxu1 }
 0x1ac   : > { %v1803_v49 = vsel %vm1791_vm11, %v1788_v39, %v1800_v44 }
 0x1ad   : > { %v1804_v50 = vsel %vm1792_vm12, %v1789_v41, %v1801_v46  ;;  %v4058_v51 = vmul.f32 %v1813_v42, %v1803_v49  ;;  %v3442_v42 = vld [vmem:[%s4270_s5 + $0x20] sm:$0xff] }
 0x1ae   : > { %v4060_v52 = vmul.f32 %v1817_v43, %v1804_v50  ;;  %v1447_v53 = vpop.f32.mrb[12].mxu1  ;;  %v3445_v50 = vld [vmem:[%s4270_s5 + $0x28] sm:$0xff] }
 0x1af   : > { %v1453_v54 = vadd.f32 %v1447_v53, %v1289_v47  ;;  %1844 = vrot.lane.b32.xlu1 %v4058_v51, %s3755_s25  ;;  %v3531_v55 = vpop.f32.mrb[13].mxu1 }
 0x1b0   : > { %1846 = vrot.lane.b32.xlu0 %v4060_v52, %s3755_s25 }
 0x1b2   : > { %v1611_v56 = vpop.f32.mrb[14].mxu1 }
 0x1b3   : > { %v1617_v57 = vadd.f32 %v1611_v56, %v1453_v54  ;;  %1842 = vrot.lane.b32.xlu1 %v3743_v0, %s3755_s25  ;;  %v3536_v58 = vpop.f32.mrb[15].mxu1 }
 0x1b4   : > { %2003 = vrot.lane.b32.xlu0 %v4058_v51, %s3756_s26 }
 0x1b6   : > { %v1775_v59 = vpop.f32.mrb[16].mxu1 }
 0x1b7   : > { %v1781_v60 = vadd.f32 %v1775_v59, %v1617_v57  ;;  %2005 = vrot.lane.b32.xlu1 %v4060_v52, %s3756_s26  ;;  %v3541_v61 = vpop.f32.mrb[17].mxu1  ;;  %v3448_v57 = vld [vmem:[%s4270_s5 + $0x30] sm:$0xff] }
 0x1b8   : > { %2001 = vrot.lane.b32.xlu0 %v3743_v0, %s3756_s26 }
 0x1b9   : > { %v1790_v62 = vadd.f32 %v1786_v30, %v1781_v60 }
 0x1bb   : > { %2164 = vrot.lane.b32.xlu1 %v4058_v51, %s3757_s10  ;;  %v1802_v1 = vmul.f32 %v1798_v35, %v1790_v62  ;;  %vm1793_vm13 = vcmp.gt.f32.partialorder %v1790_v62, 0.0  ;;  %v3439_v35 = vld [vmem:[%s4270_s5 + $0x18] sm:$0xff] }
 0x1bc   : > { %2166 = vrot.lane.b32.xlu0 %v4060_v52, %s3757_s10 }
 0x1bd   : > { %v1805_v3 = vsel %vm1793_vm13, %v1790_v62, %v1802_v1  ;;  %v3451_v62 = vld [vmem:[%s4270_s5 + $0x38] sm:$0xff] }
 0x1be   : > { %v4074_v4 = vmul.f32 %v1821_v2, %v1805_v3 }
 0x1bf   : > { %2162 = vrot.lane.b32.xlu1 %v3743_v0, %s3757_s10 }
 0x1c0   : > { %2328 = vrot.lane.b32.xlu0 %v4058_v51, %s3758_s12 }
 0x1c3   : > { %2330 = vrot.lane.b32.xlu1 %v4060_v52, %s3758_s12 }
 0x1c4   : > { %2326 = vrot.lane.b32.xlu0 %v3743_v0, %s3758_s12 }
 0x1c7   : > { %1848 = vrot.lane.b32.xlu1 %v4074_v4, %s3755_s25 }
 0x1c8   : > { %2007 = vrot.lane.b32.xlu0 %v4074_v4, %s3756_s26  ;;  %s296_s26 = sand.u32 1, %s3733_s28  }
 0x1cb   : > { %2168 = vrot.lane.b32.xlu1 %v4074_v4, %s3757_s10  ;;  %s3619_s10 = smul.u32 24, %s296_s26 }
 0x1cc   : > { %2647 = vrot.lane.b32.xlu0 %v4058_v51, %s3759_s13 }
 0x1cf   : > { %2651 = vrot.lane.b32.xlu1 %v4074_v4, %s3759_s13 }
 0x1d0   : > { %2649 = vrot.lane.b32.xlu0 %v4060_v52, %s3759_s13 }
 0x1d3   : > { %2332 = vrot.lane.b32.xlu1 %v4074_v4, %s3758_s12  ;;  %s298_s12 = scalar_lea.vmem [#allocation3], %s3619_s10 }
 0x1d4   : > { %2811 = vrot.lane.b32.xlu0 %v4058_v51, %s3745_s23 }
 0x1d7   : > { %2815 = vrot.lane.b32.xlu1 %v4074_v4, %s3745_s23 }
 0x1d8   : > { %2813 = vrot.lane.b32.xlu0 %v4060_v52, %s3745_s23 }
 0x1db   : > { %2653 = vrot.lane.b32.xlu1 %v3743_v0, %s3759_s13  ;;  %s3620_s13 = smul.u32 384, %s3827_s9  ;;  %s3326_s9 = scalar_lea.sflag [#allocation4], %s296_s26 }
 0x1dc   : > { %2817 = vrot.lane.b32.xlu0 %v3743_v0, %s3745_s23  ;;  %s3340_s23 = sshll.u32 %s298_s12, 4  ;;  %s4225_s23 = int_to_ptr.vmem [resolvable:$true] %s3340_s23 }
 0x1dd   : > { %s4223_s19 = scalar_lea.hbm %s4273_s8, %s3620_s13 }
 0x1df   : > { %2974 = vrot.lane.b32.xlu1 %v4058_v51, %s3744_s22 }
 0x1e0   : > { %2978 = vrot.lane.b32.xlu0 %v4074_v4, %s3744_s22 }
 0x1e3   : > { %2976 = vrot.lane.b32.xlu1 %v4060_v52, %s3744_s22 }
 0x1e4   : > { %2980 = vrot.lane.b32.xlu0 %v3743_v0, %s3744_s22  ;;  %s3679_s22 = scalar_lea.vmem %s4225_s23, 384 }
 0x1e5   : > { %p3680_p11 = scmp.ne.s32.totalorder %s4225_s23, %s3679_s22 }
 0x1e7   : > { %3139 = vrot.lane.b32.xlu1 %v4060_v52, %s3746_s24  ;;  %p3681_p12 = pnand %p3680_p11, %p3844_p5 }
 0x1e8   : > { %3141 = vrot.lane.b32.xlu0 %v4074_v4, %s3746_s24 }
 0x1e9   : > { %p3682_p13 = pneg %p3681_p12 }
 0x1eb   : > { %3143 = vrot.lane.b32.xlu1 %v3743_v0, %s3746_s24 }
 0x1ec   : > { %3137 = vrot.lane.b32.xlu0 %v4058_v51, %s3746_s24  ;;  %s3683_s24 = sshll.u32 %s3760_s20, 4  ;;  %s3684_s24 = int_to_ptr.vmem [resolvable:$false] %s3683_s24 }
 0x1ed   : > { %s3685_s21 = scalar_lea.vmem %s3684_s24, 768  ;;  %p3686_p0 = scmp.lt.s32.totalorder %s4225_s23, %s3684_s24 }
 0x1ee   : > { %p3687_p1 = scmp.lt.s32.totalorder %s3685_s21, %s3679_s22 }
 0x1ef   : > { %3301 = vperm.xlu1 %3678, %v3298_v5   ;;  %v3454_v5 = vld [vmem:[%s4270_s5 + $0x40] sm:$0xff] }
 0x1f0   : > { %3313 = vperm.xlu0 %3677, %v3310_v6   ;;  %p3688_p2 = por %p3687_p1, %p3686_p0 }
 0x1f2   : > { %p3689_p3 = pnand %p3688_p2, %p3682_p13 }
 0x221   : > { %v1845_v7 = vpop.permute.xlu1 %1844 }
 0x222   : > { %v1847_v8 = vpop.permute.xlu0 %1846 }
 0x223   : > { %v1852_v9 = vsel %vm1850_vm14, %v1845_v7, %v1847_v8 }
 0x224   : > { %1860 = vmatprep.subr.mxu0 %v1852_v9 }
 0x225   : > { %v1843_v10 = vpop.permute.xlu1 %1842 }
 0x226   : > { %v1851_v12 = vsel %vm1850_vm14, %v1843_v10, %v1845_v7  ;;  %v2004_v13 = vpop.permute.xlu0 %2003 }
 0x227   : > { %1861 = vmatpush1.msra.mxu0 %v1851_v12 }
 0x228   : > { %3432 = vmatmul.mubr.msk.f32.vlgmr.msra.gmra.mrb[2].mxu0 %vm330_vm2, %v3431_v11 }
 0x229   : > { %v2006_v14 = vpop.permute.xlu1 %2005  ;;  %2083 = vmatprep.mubr.f32.mxu0 %v3743_v0 }
 0x22a   : > { %v2002_v15 = vpop.permute.xlu0 %2001  ;;  %v2011_v16 = vsel %vm2009_vm15, %v2004_v13, %v2006_v14 }
 0x22b   : > { %v2010_v17 = vsel %vm2009_vm15, %v2002_v15, %v2004_v13  ;;  %2019 = vmatprep.subr.mxu0 %v2011_v16 }
 0x22c   : > { %2020 = vmatpush1.msra.mxu0 %v2010_v17 }
 0x22d   : > { %v2165_v18 = vpop.permute.xlu1 %2164 }
 0x22e   : > { %v2167_v20 = vpop.permute.xlu0 %2166 }
 0x22f   : > { %v2172_v21 = vsel %vm2170_vm5, %v2165_v18, %v2167_v20 }
 0x230   : > { %3434 = vmatmul.mubr.msk.f32.vlgmr.msra.gmra.mrb[2].mxu0 %vm330_vm2, %v1831_v19  ;;  %2180 = vmatprep.subr.mxu0 %v2172_v21 }
 0x231   : > { %v2163_v22 = vpop.permute.xlu1 %2162  ;;  %2244 = vmatprep.mubr.f32.mxu0 %v3743_v0 }
 0x232   : > { %v2171_v23 = vsel %vm2170_vm5, %v2163_v22, %v2165_v18  ;;  %v2329_v24 = vpop.permute.xlu0 %2328 }
 0x233   : > { %2181 = vmatpush1.msra.mxu0 %v2171_v23 }
 0x235   : > { %v2331_v25 = vpop.permute.xlu1 %2330 }
 0x236   : > { %v2327_v27 = vpop.permute.xlu0 %2326  ;;  %v2336_v28 = vsel %vm2334_vm6, %v2329_v24, %v2331_v25 }
 0x237   : > { %v2335_v29 = vsel %vm2334_vm6, %v2327_v27, %v2329_v24  ;;  %2344 = vmatprep.subr.mxu0 %v2336_v28 }
 0x238   : > { %3437 = vmatmul.mubr.msk.f32.vlgmr.msra.gmra.mrb[2].mxu0 %vm330_vm2, %v3436_v26 }
 0x239   : > { %2345 = vmatpush1.msra.mxu0 %v2335_v29  ;;  %v1849_v30 = vpop.permute.xlu1 %1848  ;;  %2408 = vmatprep.mubr.f32.mxu0 %v3743_v0 }
 0x23a   : > { %2493 = vmatprep.subr.mxu0 %v4060_v52  ;;  %v1853_v31 = vsel %vm1850_vm14, %v1847_v8, %v1849_v30  ;;  %v2008_v32 = vpop.permute.xlu0 %2007 }
 0x23b   : > { %v2012_v33 = vsel %vm2009_vm15, %v2006_v14, %v2008_v32  ;;  %3543 = vmatpush3.msra.mxu1 %v1853_v31 }
 0x23c   : > { %3545 = vmatmul.mubr.msk.f32.vlgmr.msra.gmra.mrb[18].mxu1 %vm330_vm2, %v3431_v11  ;;  %3547 = vmatprep.subr.mxu1 %v3743_v0 }
 0x23d   : > { %3548 = vmatpush3.msra.mxu1 %v2012_v33  ;;  %v2169_v34 = vpop.permute.xlu1 %2168  ;;  %3549 = vmatprep.mubr.msk.f32.mxu1 %vm3752_vm0, %v3743_v0 }
 0x23e   : > { %v2173_v36 = vsel %vm2170_vm5, %v2167_v20, %v2169_v34  ;;  %v2648_v37 = vpop.permute.xlu0 %2647  ;;  %3552 = vmatprep.subr.mxu1 %v3743_v0 }
 0x240   : > { %3550 = vmatmul.mubr.msk.f32.vlgmr.msra.gmra.mrb[20].mxu1 %vm330_vm2, %v1831_v19  ;;  %3440 = vmatmul.mubr.msk.f32.vlgmr.msra.gmra.mrb[2].mxu0 %vm330_vm2, %v3439_v35 }
 0x241   : > { %3553 = vmatpush3.msra.mxu1 %v2173_v36  ;;  %2494 = vmatpush1.msra.mxu0 %v4058_v51  ;;  %v2652_v38 = vpop.permute.xlu1 %2651 }
 0x242   : > { %v2650_v39 = vpop.permute.xlu0 %2649  ;;  %3554 = vmatprep.mubr.msk.f32.mxu1 %vm3752_vm0, %v3743_v0  ;;  %3557 = vmatprep.subr.mxu1 %v3743_v0 }
 0x243   : > { %v2657_v40 = vsel %vm2655_vm7, %v2650_v39, %v2652_v38  ;;  %2557 = vmatprep.mubr.f32.mxu0 %v3743_v0  ;;  %v2656_v45 = vsel %vm2655_vm7, %v2648_v37, %v2650_v39 }
 0x244   : > { %2665 = vmatprep.subr.mxu0 %v2657_v40  ;;  %3555 = vmatmul.mubr.msk.f32.vlgmr.msra.gmra.mrb[22].mxu1 %vm330_vm2, %v3436_v26 }
 0x245   : > { %v2333_v41 = vpop.permute.xlu1 %2332  ;;  %3559 = vmatprep.mubr.msk.f32.mxu1 %vm3752_vm0, %v3743_v0 }
 0x246   : > { %v2337_v43 = vsel %vm2334_vm6, %v2331_v25, %v2333_v41  ;;  %v2812_v44 = vpop.permute.xlu0 %2811 }
 0x247   : > { %3558 = vmatpush3.msra.mxu1 %v2337_v43 }
 0x248   : > { %3443 = vmatmul.mubr.msk.f32.vlgmr.msra.gmra.mrb[2].mxu0 %vm330_vm2, %v3442_v42  ;;  %3562 = vmatprep.subr.mxu1 %v3743_v0 }
 0x249   : > { %2666 = vmatpush1.msra.mxu0 %v2656_v45  ;;  %3560 = vmatmul.mubr.msk.f32.vlgmr.msra.gmra.mrb[24].mxu1 %vm330_vm2, %v3439_v35  ;;  %v2816_v46 = vpop.permute.xlu1 %2815 }
 0x24a   : > { %3563 = vmatpush3.msra.mxu1 %v4074_v4  ;;  %v2814_v47 = vpop.permute.xlu0 %2813  ;;  %3564 = vmatprep.mubr.msk.f32.mxu1 %vm3752_vm0, %v3743_v0 }
 0x24b   : > { %v2820_v48 = vsel %vm483_vm3, %v2814_v47, %v2816_v46  ;;  %3567 = vmatprep.subr.mxu1 %v3743_v0  ;;  %2729 = vmatprep.mubr.f32.mxu0 %v3743_v0  ;;  %v2819_v54 = vsel %vm483_vm3, %v2812_v44, %v2814_v47 }
 0x24c   : > { %2828 = vmatprep.subr.mxu0 %v2820_v48 }
 0x24d   : > { %3565 = vmatmul.mubr.msk.f32.vlgmr.msra.gmra.mrb[26].mxu1 %vm330_vm2, %v3442_v42  ;;  %v2654_v49 = vpop.permute.xlu1 %2653 }
 0x24e   : > { %v2658_v51 = vsel %vm2655_vm7, %v2652_v38, %v2654_v49  ;;  %v2818_v52 = vpop.permute.xlu0 %2817  ;;  %3569 = vmatprep.mubr.msk.f32.mxu1 %vm3752_vm0, %v3743_v0 }
 0x24f   : > { %v2821_v53 = vsel %vm483_vm3, %v2816_v46, %v2818_v52  ;;  %3568 = vmatpush3.msra.mxu1 %v2658_v51 }
 0x250   : > { %3446 = vmatmul.mubr.msk.f32.vlgmr.msra.gmra.mrb[2].mxu0 %vm330_vm2, %v3445_v50  ;;  %3572 = vmatprep.subr.mxu1 %v3743_v0 }
 0x251   : > { %2829 = vmatpush1.msra.mxu0 %v2819_v54  ;;  %3570 = vmatmul.mubr.msk.f32.vlgmr.msra.gmra.mrb[28].mxu1 %vm330_vm2, %v3445_v50  ;;  %v2975_v55 = vpop.permute.xlu1 %2974 }
 0x252   : > { %3573 = vmatpush3.msra.mxu1 %v2821_v53  ;;  %v2979_v56 = vpop.permute.xlu0 %2978  ;;  %3574 = vmatprep.mubr.msk.f32.mxu1 %vm3752_vm0, %v3743_v0 }
 0x253   : > { %2892 = vmatprep.mubr.f32.mxu0 %v3743_v0  ;;  %3577 = vmatprep.subr.mxu1 %v3743_v0 }
 0x255   : > { %3575 = vmatmul.mubr.msk.f32.vlgmr.msra.gmra.mrb[30].mxu1 %vm330_vm2, %v3448_v57  ;;  %v2977_v58 = vpop.permute.xlu1 %2976 }
 0x256   : > { %v2982_v59 = vsel %vm323_vm1, %v2975_v55, %v2977_v58  ;;  %v2981_v60 = vpop.permute.xlu0 %2980  ;;  %v2983_v61 = vsel %vm323_vm1, %v2977_v58, %v2979_v56  ;;  %3579 = vmatprep.mubr.msk.f32.mxu1 %vm3752_vm0, %v3743_v0 }
 0x257   : > { %v2984_v63 = vsel %vm323_vm1, %v2979_v56, %v2981_v60  ;;  %2991 = vmatprep.subr.mxu0 %v2983_v61 }
 0x258   : > { %3449 = vmatmul.mubr.msk.f32.vlgmr.msra.gmra.mrb[2].mxu0 %vm330_vm2, %v3448_v57  ;;  %3578 = vmatpush3.msra.mxu1 %v2984_v63 }
 0x259   : > { %2992 = vmatpush1.msra.mxu0 %v2982_v59  ;;  %3580 = vmatmul.mubr.msk.f32.vlgmr.msra.gmra.mrb[32].mxu1 %vm330_vm2, %v3451_v62  ;;  %v3140_v1 = vpop.permute.xlu1 %3139 }
 0x25a   : > { %v3142_v2 = vpop.permute.xlu0 %3141  ;;  %3582 = vmatprep.subr.mxu1 %v3743_v0  ;;  %3055 = vmatprep.mubr.f32.mxu0 %v3743_v0 }
 0x25b   : > { %v3146_v3 = vsel %vm644_vm4, %v3140_v1, %v3142_v2  ;;  %3584 = vmatprep.mubr.msk.f32.mxu1 %vm3752_vm0, %v3743_v0 }
 0x25c   : > { %3154 = vmatprep.subr.mxu0 %v3146_v3 }
 0x25d   : > { %v3144_v4 = vpop.permute.xlu1 %3143 }
 0x25e   : > { %v3147_v6 = vsel %vm644_vm4, %v3142_v2, %v3144_v4  ;;  %v3138_v7 = vpop.permute.xlu0 %3137 }
 0x25f   : > { %v3145_v8 = vsel %vm644_vm4, %v3138_v7, %v3140_v1  ;;  %3583 = vmatpush3.msra.mxu1 %v3147_v6 }
 0x260   : > { %3452 = vmatmul.mubr.msk.f32.vlgmr.msra.gmra.mrb[2].mxu0 %vm330_vm2, %v3451_v62  ;;  %3585 = vmatmul.mubr.msk.f32.vlgmr.msra.gmra.mrb[34].mxu1 %vm330_vm2, %v3454_v5 }
 0x261   : > { %3155 = vmatpush1.msra.mxu0 %v3145_v8  ;;  %3218 = vmatprep.mubr.f32.mxu0 %v3743_v0 }
 0x268   : > { %3455 = vmatmul.mubr.msk.f32.vlgmr.msra.gmra.mrb[2].mxu0 %vm330_vm2, %v3454_v5 }
 0x26e   : > { %v3302_v34 = vpop.permute.xlu1 %3301 }
 0x26f   : > { %v3314_v36 = vpop.permute.xlu0 %3313 }
 0x30f   : > { %v1997_v9 = vpop.f32.mrb[18].mxu1 }
 0x310   : > { %v3546_v10 = vpop.f32.mrb[19].mxu1 }
 0x313   : > { %v2156_v11 = vpop.f32.mrb[20].mxu1 }
 0x314   : > { %v2157_v12 = vadd.f32 %v2156_v11, %v1997_v9  ;;  %v3551_v13 = vpop.f32.mrb[21].mxu1 }
 0x317   : > { %v2317_v14 = vpop.f32.mrb[22].mxu1 }
 0x318   : > { %v2323_v15 = vadd.f32 %v2317_v14, %v2157_v12  ;;  %v3556_v16 = vpop.f32.mrb[23].mxu1 }
 0x31c   : > { %v2481_v17 = vpop.f32.mrb[24].mxu1 }
 0x31d   : > { %v2487_v18 = vadd.f32 %v2481_v17, %v2323_v15  ;;  %v3561_v19 = vpop.f32.mrb[25].mxu1 }
 0x320   : > { %v2630_v20 = vpop.f32.mrb[26].mxu1 }
 0x321   : > { %v2636_v21 = vadd.f32 %v2630_v20, %v2487_v18  ;;  %v3566_v22 = vpop.f32.mrb[27].mxu1 }
 0x324   : > { %v2802_v23 = vpop.f32.mrb[28].mxu1 }
 0x325   : > { %v2808_v24 = vadd.f32 %v2802_v23, %v2636_v21  ;;  %v3571_v0 = vpop.f32.mrb[29].mxu1 }
 0x328   : > { %v2965_v25 = vpop.f32.mrb[30].mxu1 }
 0x329   : > { %v2971_v26 = vadd.f32 %v2965_v25, %v2808_v24  ;;  %v3576_v27 = vpop.f32.mrb[31].mxu1 }
 0x32c   : > { %v3128_v28 = vpop.f32.mrb[32].mxu1 }
 0x32d   : > { %v3134_v29 = vadd.f32 %v3128_v28, %v2971_v26  ;;  %v3581_v30 = vpop.f32.mrb[33].mxu1 }
 0x333   : > { %v3291_v31 = vpop.f32.mrb[34].mxu1 }
 0x334   : > { %v3297_v32 = vadd.f32 %v3291_v31, %v3134_v29  ;;  %v3586_v33 = vpop.f32.mrb[35].mxu1 }
 0x336   : > { %v3306_v35 = vadd.f32 %v3302_v34, %v3297_v32 }
 0x338   : > { %vm3309_vm0 = vcmp.gt.f32.partialorder %v3306_v35, 0.0  ;;  %v3318_v37 = vmul.f32 %v3314_v36, %v3306_v35 }
 0x33a   : > { %v3321_v38 = vsel %vm3309_vm0, %v3306_v35, %v3318_v37 }
 0x33b   : > { %3324 = vst [vmem:[%s298_s12 + $0x10] sm:$0xff] %v3321_v38  ;;  %v3220_v39 = vpop.f32.mrb[2].mxu0 }
 0x33c   : > { %v3304_v40 = vadd.f32 %v3302_v34, %v3220_v39  ;;  %v3222_v41 = vpop.f32.mrb[3].mxu0 }
 0x33d   : > { %v3305_v42 = vadd.f32 %v3302_v34, %v3222_v41 }
 0x33e   : > { %vm3307_vm1 = vcmp.gt.f32.partialorder %v3304_v40, 0.0  ;;  %v3316_v43 = vmul.f32 %v3314_v36, %v3304_v40 }
 0x33f   : > { %vm3308_vm2 = vcmp.gt.f32.partialorder %v3305_v42, 0.0  ;;  %v3317_v44 = vmul.f32 %v3314_v36, %v3305_v42 }
 0x340   : > { %v3319_v45 = vsel %vm3307_vm1, %v3304_v40, %v3316_v43 }
 0x341   : > { %3322 = vst [vmem:[%s298_s12] sm:$0xff] %v3319_v45  ;;  %v3320_v46 = vsel %vm3308_vm2, %v3305_v42, %v3317_v44 }
 0x342   : > { %3323 = vst [vmem:[%s298_s12 + $0x8] sm:$0xff] %v3320_v46 }
 0x343   : > { %3692 = shalt.err (!%p3689_p3)
}
 0x344   : > { %s3693_s25 = scalar_lea.hbm %s4223_s19, 384  ;;  %s3697_s12 = scalar_lea.hbm %s4273_s8, 768 }
 0x345   : > { %p3694_p4 = scmp.ne.s32.totalorder %s4223_s19, %s3693_s25  ;;  %p3698_p9 = scmp.lt.u32.totalorder %s4223_s19, %s4273_s8 }
 0x346   : > { %p3699_p10 = scmp.lt.u32.totalorder %s3697_s12, %s3693_s25  ;;  %p3701_p12 = scmp.lt.u32.totalorder %s3693_s25, %s4223_s19 }
 0x347   : > { %p3695_p7 = pnand %p3694_p4, %p3844_p5 }
 0x348   : > { %p3700_p11 = por %p3699_p10, %p3698_p9 }
 0x349   : > { %p3696_p8 = pneg %p3695_p7 }
 0x34a   : > { %p3702_p13 = por %p3701_p12, %p3700_p11 }
 0x34c   : > { %p3703_p0 = pnand %p3702_p13, %p3696_p8 }
 0x34e   : > { %3706 = shalt.err (!%p3703_p0)
}
 0x34f   : > { %3621 = dma.vmem_to_hbm [thread:$0]  (%p3844_p5), %s4225_s23, 384, %s4223_s19, %s3326_s9  }
 0x350 PF: > { %p3627_p1 = scmp.ge.s32.totalorder %s3741_s30, 2  ;;  %s3352_s18 = sand.u32 1, %s3729_s27  }
 0x351   : > { %s3353_s22 = scalar_lea.sflag [#allocation4], %s3352_s18 }
 0x352   : > { %p3624_p2 = pnand %p3627_p1, %p3848_p6 }
 0x354   : > { %3724 = dma.done.wait (!%p3624_p2), %s3353_s22, 384  }
 0x355   : > { %3726 = vsyncadd (!%p3624_p2), %s3353_s22, 4294966912  ;;  %p18_p3 = scmp.ge.s32.totalorder %s3831_s11, 4   ;;  %s4276_s27 = smov %s3733_s28 }
 0x356   : > { %s4277_s28 = smov %s3737_s29  ;;  %s4278_s29 = smov %s3842_s14 }
 0x357   : > { %s4279_s30 = smov %s3831_s11  ;;  %20 = sbr.rel (!%p18_p3) target bundleno = 3 (0x3), region = 103 }
 0x35e   :  { %3358 = vsyncpa [#allocation4], 1 }
 0x35f   :  { %3360 = vsyncpa [#allocation4 + $0x1], 1 }

</bundles_post_ra>
